<compile_context>
chip_gen: v7x
topology: tpu7x:2x2x1
jax: 0.10.0
libtpu: 0.0.40
codegen_flags: <defaults>
</compile_context>

<pallas_src>
import jax
import jax.numpy as jnp
from jax import lax
from jax.experimental import pallas as pl
from jax.experimental.pallas import tpu as pltpu

_LANES = 128
_SMOOTH = 1.0


def _round_up(a, m):
    return ((a + m - 1) // m) * m


def _sublane_multiple(*dtypes):
    # Packed sublane tile: f32 -> 8, bf16/f16 -> 16, int8/bool -> 32.
    itemsize = min(jnp.dtype(d).itemsize for d in dtypes)
    return max(8, 32 // max(1, itemsize))


def _make_dice_kernel(R, TR, NS, needs_mask):
    """R/TR/NS/needs_mask are static Python values baked into the kernel."""

    def kernel(x_ref, t_ref, dice_ref, inter_acc, denom_acc):
        # x_ref/t_ref: (NS, TR, 128) native dtype; dice_ref: (1, NS, 1) f32.
        # inter_acc/denom_acc: (NS, 128) f32 per-lane partial sums (scratch).
        d = pl.program_id(1)

        @pl.when(d == 0)
        def _init():
            inter_acc[...] = jnp.zeros_like(inter_acc)
            denom_acc[...] = jnp.zeros_like(denom_acc)

        x = x_ref[...].astype(jnp.float32)  # (NS, TR, 128)
        t = t_ref[...].astype(jnp.float32)

        if needs_mask:
            # Only the last d tile can contain rows >= R (undefined data from a
            # partial block); zero them so all three sums stay exact.
            row = lax.broadcasted_iota(jnp.int32, (TR, _LANES), 0) + d * TR
            valid = (row < R)[None]  # (1, TR, 128)
            x = jnp.where(valid, x, 0.0)
            t = jnp.where(valid, t, 0.0)

        # Per-lane partial sums; the cross-lane reduce is deferred to finalize.
        inter_acc[...] += jnp.sum(x * t, axis=1)  # (NS, 128)
        denom_acc[...] += jnp.sum(x + t, axis=1)  # (NS, 128) fused denominator

        @pl.when(d == pl.num_programs(1) - 1)
        def _finalize():
            s = jnp.float32(_SMOOTH)
            inter = jnp.sum(inter_acc[...], axis=1, keepdims=True)  # (NS, 1)
            denom = jnp.sum(denom_acc[...], axis=1, keepdims=True)  # (NS, 1)
            dice = (2.0 * inter + s) / (denom + s)                  # exact divide
            dice_ref[...] = dice.reshape(1, NS, 1)

    return kernel


def binary_dice_loss_ref(inputs, targets):
    """Pure-JAX reference mirroring the PyTorch forward (also the fast path)."""
    N = targets.shape[0]
    smooth = jnp.float32(_SMOOTH)
    x = inputs.reshape(N, -1).astype(jnp.float32)
    t = targets.reshape(N, -1).astype(jnp.float32)
    inter = jnp.sum(x * t, axis=1)
    dice = (2.0 * inter + smooth) / (jnp.sum(x, axis=1) + jnp.sum(t, axis=1) + smooth)
    return 1.0 - jnp.sum(dice) / N


def binary_dice_loss(inputs, targets, *, max_tile_rows=2048,
                     min_pallas_bytes=512 * 1024):
    """loss = 1 - mean_n[(2*sum(x*t)+1)/(sum(x)+sum(t)+1)], like BinaryDiceLoss."""
    N = targets.shape[0]
    x = inputs.reshape(N, -1)
    t = targets.reshape(N, -1)
    D = x.shape[1]

    total_bytes = x.size * x.dtype.itemsize + t.size * t.dtype.itemsize
    if total_bytes < min_pallas_bytes:
        # Tiny inputs: the fused XLA version beats pallas launch/step overhead.
        return binary_dice_loss_ref(inputs, targets)

    # Lane-dense layout: at worst pad D to the next multiple of 128 (zeros are
    # exact for all three sums); the row axis is never padded in HBM.
    D128 = _round_up(D, _LANES)
    if D128 != D:
        x = jnp.pad(x, ((0, 0), (0, D128 - D)))
        t = jnp.pad(t, ((0, 0), (0, D128 - D)))
    R = D128 // _LANES
    x3 = x.reshape(N, R, _LANES)
    t3 = t.reshape(N, R, _LANES)

    sub = _sublane_multiple(x3.dtype, t3.dtype)

    if R > max_tile_rows:
        # Large samples: tile the reduction axis. num_d = cdiv(R, TR) guarantees
        # the last block starts inside the array; its tail rows are masked.
        TR = _round_up(pl.cdiv(R, pl.cdiv(R, max_tile_rows)), sub)
        num_d = pl.cdiv(R, TR)
        NS = 1
    else:
        # Whole sample fits in one tile: use the full (possibly unaligned) row
        # extent (block dim == array dim is always legal) and batch samples.
        TR = R
        num_d = 1
        NS = max(1, min(N, max_tile_rows // _round_up(TR, sub)))
    needs_mask = TR * num_d != R
    num_nb = pl.cdiv(N, NS)

    in_bytes = x3.size * x3.dtype.itemsize + t3.size * t3.dtype.itemsize

    dice = pl.pallas_call(
        _make_dice_kernel(R, TR, NS, needs_mask),
        out_shape=jax.ShapeDtypeStruct((num_nb, NS, 1), jnp.float32),
        grid_spec=pltpu.PrefetchScalarGridSpec(
            num_scalar_prefetch=0,
            grid=(num_nb, num_d),  # reduction axis last
            in_specs=[
                pl.BlockSpec((NS, TR, _LANES), lambda n, d: (n, d, 0)),
                pl.BlockSpec((NS, TR, _LANES), lambda n, d: (n, d, 0)),
            ],
            out_specs=pl.BlockSpec((1, NS, 1), lambda n, d: (n, 0, 0)),
            scratch_shapes=[
                pltpu.VMEM((NS, _LANES), jnp.float32),  # intersection partials
                pltpu.VMEM((NS, _LANES), jnp.float32),  # (x + t) partials
            ],
        ),
        compiler_params=pltpu.CompilerParams(
            # Sample axis independent -> megacore on v7x; d axis carries the
            # accumulators, so it stays "arbitrary".
            dimension_semantics=("parallel", "arbitrary"),
        ),
        cost_estimate=pl.CostEstimate(
            flops=3 * N * R * _LANES,
            transcendentals=0,
            bytes_accessed=in_bytes + num_nb * NS * 4,
        ),
    )(x3, t3)

    # Tiny epilogue: drop padded sample slots, then 1 - mean(dice).
    dice_flat = dice.reshape(-1)[:N]
    return 1.0 - jnp.sum(dice_flat) / N


if __name__ == "__main__":
    key = jax.random.PRNGKey(0)
    k1, k2, k3, k4, k5, k6 = jax.random.split(key, 6)

    # Case 1: spec-like tiny shape -> exercises the fused-XLA fast path.
    x1 = jax.nn.sigmoid(jax.random.normal(k1, (2, 4, 16, 16), dtype=jnp.float32))
    t1 = (jax.random.uniform(k2, (2, 4, 16, 16)) > 0.5).astype(jnp.float32)
    ref1 = binary_dice_loss_ref(x1, t1)
    out1 = binary_dice_loss(x1, t1)
    jax.block_until_ready(out1)
    assert jnp.allclose(out1, ref1, rtol=1e-4, atol=1e-5), (out1, ref1)

    # Case 2: same inputs, forced through the Pallas kernel
    # (D=1024 -> aligned, NS=2 samples batched into one grid step).
    out2 = binary_dice_loss(x1, t1, min_pallas_bytes=0)
    jax.block_until_ready(out2)
    assert jnp.allclose(out2, ref1, rtol=1e-4, atol=1e-5), (out2, ref1)

    # Case 3: D=300 (not a multiple of 128) -> pad-to-128 + full-row block.
    x3 = jax.nn.sigmoid(jax.random.normal(k3, (2, 3, 10, 10), dtype=jnp.float32))
    t3 = (jax.random.uniform(k4, (2, 3, 10, 10)) > 0.5).astype(jnp.float32)
    out3 = binary_dice_loss(x3, t3, min_pallas_bytes=0)
    jax.block_until_ready(out3)
    ref3 = binary_dice_loss_ref(x3, t3)
    assert jnp.allclose(out3, ref3, rtol=1e-4, atol=1e-5), (out3, ref3)

    # Case 4: force a multi-tile reduction with a ragged last tile (R=20, TR=8)
    # -> exercises the in-kernel row mask instead of wrapper-side padding.
    x4 = jax.nn.sigmoid(jax.random.normal(k5, (2, 10, 16, 16), dtype=jnp.float32))
    t4 = (jax.random.uniform(k6, (2, 10, 16, 16)) > 0.5).astype(jnp.float32)
    out4 = binary_dice_loss(x4, t4, max_tile_rows=8, min_pallas_bytes=0)
    jax.block_until_ready(out4)
    ref4 = binary_dice_loss_ref(x4, t4)
    assert jnp.allclose(out4, ref4, rtol=1e-4, atol=1e-5), (out4, ref4)

    print("KERNEL_OK")
</pallas_src>

<mosaic_0001>
module attributes {stable_mosaic.version = 11 : i64} {
  func.func @kernel(%arg0: i32, %arg1: i32, %arg2: memref<2x8x128xf32, #tpu.memory_space<vmem>>, %arg3: memref<2x8x128xf32, #tpu.memory_space<vmem>>, %arg4: memref<1x2x1xf32, #tpu.memory_space<vmem>>, %arg5: memref<2x128xf32, #tpu.memory_space<vmem>>, %arg6: memref<2x128xf32, #tpu.memory_space<vmem>>) attributes {dimension_semantics = [#tpu.dimension_semantics<parallel>, #tpu.dimension_semantics<arbitrary>], iteration_bounds = array<i64: 1, 1>, scalar_prefetch = 0 : i64, scratch_operands = 2 : i64, tpu.core_type = #tpu.core_type<tc>, window_params = [{transform_indices = @transform_0, window_bounds = array<i64: 2, 8, 128>}, {transform_indices = @transform_1, window_bounds = array<i64: 2, 8, 128>}, {transform_indices = @transform_2, window_bounds = array<i64: 1, 2, 1>}]} {
    %c0_i32 = arith.constant 0 : i32
    %0 = arith.cmpi eq, %arg1, %c0_i32 : i32
    %1 = arith.extui %0 : i1 to i32
    %c0_i32_0 = arith.constant 0 : i32
    %2 = arith.cmpi ne, %1, %c0_i32_0 : i32
    scf.if %2 {
      %cst_17 = arith.constant 0.000000e+00 : f32
      %18 = vector.broadcast %cst_17 : f32 to vector<2x128xf32>
      %c0_18 = arith.constant 0 : index
      %c0_19 = arith.constant 0 : index
      %19 = vector.load %arg5[%c0_18, %c0_19] : memref<2x128xf32, #tpu.memory_space<vmem>>, vector<2x128xf32>
      tpu.vector_store %arg5[%c0_18, %c0_19], %18 {strides = array<i32>} : memref<2x128xf32, #tpu.memory_space<vmem>>, vector<2x128xf32>,
      %cst_20 = arith.constant 0.000000e+00 : f32
      %20 = vector.broadcast %cst_20 : f32 to vector<2x128xf32>
      %c0_21 = arith.constant 0 : index
      %c0_22 = arith.constant 0 : index
      %21 = vector.load %arg6[%c0_21, %c0_22] : memref<2x128xf32, #tpu.memory_space<vmem>>, vector<2x128xf32>
      tpu.vector_store %arg6[%c0_21, %c0_22], %20 {strides = array<i32>} : memref<2x128xf32, #tpu.memory_space<vmem>>, vector<2x128xf32>,
    } else {
    }
    %c0 = arith.constant 0 : index
    %c0_1 = arith.constant 0 : index
    %c0_2 = arith.constant 0 : index
    %3 = vector.load %arg2[%c0, %c0_1, %c0_2] : memref<2x8x128xf32, #tpu.memory_space<vmem>>, vector<2x8x128xf32>
    %c0_3 = arith.constant 0 : index
    %c0_4 = arith.constant 0 : index
    %c0_5 = arith.constant 0 : index
    %4 = vector.load %arg3[%c0_3, %c0_4, %c0_5] : memref<2x8x128xf32, #tpu.memory_space<vmem>>, vector<2x8x128xf32>
    %c0_6 = arith.constant 0 : index
    %c0_7 = arith.constant 0 : index
    %5 = vector.load %arg5[%c0_6, %c0_7] : memref<2x128xf32, #tpu.memory_space<vmem>>, vector<2x128xf32>
    %6 = arith.mulf %3, %4 : vector<2x8x128xf32>
    %cst = arith.constant dense<0.000000e+00> : vector<2x128xf32>
    %7 = vector.multi_reduction <add>, %6, %cst [1] : vector<2x8x128xf32> to vector<2x128xf32>
    %8 = arith.addf %5, %7 : vector<2x128xf32>
    %c0_8 = arith.constant 0 : index
    %c0_9 = arith.constant 0 : index
    %9 = vector.load %arg5[%c0_8, %c0_9] : memref<2x128xf32, #tpu.memory_space<vmem>>, vector<2x128xf32>
    tpu.vector_store %arg5[%c0_8, %c0_9], %8 {strides = array<i32>} : memref<2x128xf32, #tpu.memory_space<vmem>>, vector<2x128xf32>,
    %c0_10 = arith.constant 0 : index
    %c0_11 = arith.constant 0 : index
    %10 = vector.load %arg6[%c0_10, %c0_11] : memref<2x128xf32, #tpu.memory_space<vmem>>, vector<2x128xf32>
    %11 = arith.addf %3, %4 : vector<2x8x128xf32>
    %cst_12 = arith.constant dense<0.000000e+00> : vector<2x128xf32>
    %12 = vector.multi_reduction <add>, %11, %cst_12 [1] : vector<2x8x128xf32> to vector<2x128xf32>
    %13 = arith.addf %10, %12 : vector<2x128xf32>
    %c0_13 = arith.constant 0 : index
    %c0_14 = arith.constant 0 : index
    %14 = vector.load %arg6[%c0_13, %c0_14] : memref<2x128xf32, #tpu.memory_space<vmem>>, vector<2x128xf32>
    tpu.vector_store %arg6[%c0_13, %c0_14], %13 {strides = array<i32>} : memref<2x128xf32, #tpu.memory_space<vmem>>, vector<2x128xf32>,
    %c0_i32_15 = arith.constant 0 : i32
    %15 = arith.cmpi eq, %arg1, %c0_i32_15 : i32
    %16 = arith.extui %15 : i1 to i32
    %c0_i32_16 = arith.constant 0 : i32
    %17 = arith.cmpi ne, %16, %c0_i32_16 : i32
    scf.if %17 {
      %c0_17 = arith.constant 0 : index
      %c0_18 = arith.constant 0 : index
      %18 = vector.load %arg5[%c0_17, %c0_18] : memref<2x128xf32, #tpu.memory_space<vmem>>, vector<2x128xf32>
      %cst_19 = arith.constant dense<0.000000e+00> : vector<2xf32>
      %19 = vector.multi_reduction <add>, %18, %cst_19 [1] : vector<2x128xf32> to vector<2xf32>
      %20 = vector.shape_cast %19 : vector<2xf32> to vector<2x1xf32>
      %c0_20 = arith.constant 0 : index
      %c0_21 = arith.constant 0 : index
      %21 = vector.load %arg6[%c0_20, %c0_21] : memref<2x128xf32, #tpu.memory_space<vmem>>, vector<2x128xf32>
      %cst_22 = arith.constant dense<0.000000e+00> : vector<2xf32>
      %22 = vector.multi_reduction <add>, %21, %cst_22 [1] : vector<2x128xf32> to vector<2xf32>
      %23 = vector.shape_cast %22 : vector<2xf32> to vector<2x1xf32>
      %cst_23 = arith.constant 2.000000e+00 : f32
      %24 = vector.broadcast %cst_23 : f32 to vector<2x1xf32>
      %25 = arith.mulf %24, %20 : vector<2x1xf32>
      %cst_24 = arith.constant 1.000000e+00 : f32
      %26 = vector.broadcast %cst_24 : f32 to vector<2x1xf32>
      %27 = arith.addf %25, %26 : vector<2x1xf32>
      %cst_25 = arith.constant 1.000000e+00 : f32
      %28 = vector.broadcast %cst_25 : f32 to vector<2x1xf32>
      %29 = arith.addf %23, %28 : vector<2x1xf32>
      %30 = arith.divf %27, %29 : vector<2x1xf32>
      %31 = vector.shape_cast %30 : vector<2x1xf32> to vector<1x2x1xf32>
      %c0_26 = arith.constant 0 : index
      %c0_27 = arith.constant 0 : index
      %c0_28 = arith.constant 0 : index
      %32 = vector.load %arg4[%c0_26, %c0_27, %c0_28] : memref<1x2x1xf32, #tpu.memory_space<vmem>>, vector<1x2x1xf32>
      tpu.vector_store %arg4[%c0_26, %c0_27, %c0_28], %31 {strides = array<i32>} : memref<1x2x1xf32, #tpu.memory_space<vmem>>, vector<1x2x1xf32>,
    } else {
    }
    return
  }
  func.func @transform_0(%arg0: i32, %arg1: i32) -> (i32, i32, i32) {
    %c0_i32 = arith.constant 0 : i32
    %c0_i32_0 = arith.constant 0 : i32
    return %arg0, %arg1, %c0_i32 : i32, i32, i32
  }
  func.func @transform_1(%arg0: i32, %arg1: i32) -> (i32, i32, i32) {
    %c0_i32 = arith.constant 0 : i32
    %c0_i32_0 = arith.constant 0 : i32
    return %arg0, %arg1, %c0_i32 : i32, i32, i32
  }
  func.func @transform_2(%arg0: i32, %arg1: i32) -> (i32, i32, i32) {
    %c0_i32 = arith.constant 0 : i32
    %c0_i32_0 = arith.constant 0 : i32
    %c0_i32_1 = arith.constant 0 : i32
    return %arg0, %c0_i32, %c0_i32_0 : i32, i32, i32
  }
}

</mosaic_0001>

<bundles_post_ra>
// kernel: tpu_custom_call.1
= control target key start
LH: loop header
LB: loop body
LE: loop exit
PB: predicated region body
PF: predicated region fallthrough
CT: control target
= control target key end

     0   :  { %7 = vsyncpa [#allocation5], 0  ;;  %s219_s0 = inlined_call_operand.hbm [shape: f32[2,8,128], index: 0, kind: input, shape index: {}]   ;;  %s220_s1 = inlined_call_operand.hbm [shape: f32[2,8,128], index: 1, kind: input, shape index: {}]   ;;  %s221_s2 = inlined_call_operand.vmem [shape: f32[1,2,1], index: 2, kind: output, shape index: {}]  }
   0x1   :  { %8 = vsyncpa [#allocation7], 0  ;;  %s172_s9 = smov [#allocation4]   ;;  %s124_s13 = scalar_lea.hbm %s219_s0, 256 }
   0x2   :  { %s14_s10 = sshll.u32 %s172_s9, 4  ;;  %p125_p0 = scmp.ne.s32.totalorder %s219_s0, %s124_s13  ;;  %s15_s10 = int_to_ptr.vmem [resolvable:$true] %s14_s10 }
   0x3   :  { %p128_p1 = scmp.lt.u32.totalorder %s124_s13, %s219_s0 }
   0x5   :  { %p130_p2 = pnand %p128_p1, %p125_p0 }
   0x7   :  { %133 = shalt.err (!%p130_p2)
}
   0x8   :  { %s134_s18 = scalar_lea.vmem %s15_s10, 256  ;;  %p139_p4 = scmp.lt.s32.totalorder %s15_s10, %s15_s10 }
   0x9   :  { %p135_p3 = scmp.ne.s32.totalorder %s15_s10, %s134_s18  ;;  %p140_p5 = scmp.lt.s32.totalorder %s134_s18, %s134_s18 }
   0xb   :  { %p141_p6 = por %p140_p5, %p139_p4 }
   0xd   :  { %p142_p7 = pnand %p141_p6, %p135_p3 }
   0xf   :  { %145 = shalt.err (!%p142_p7)
}
  0x10   :  { %s173_s19 = smov 128   ;;  %s174_s20 = smov 8  }
  0x11   :  { %20 = dma.hbm_to_vmem [thread:$0]  %s219_s0, 256, %s15_s10, [#allocation5], %s173_s19, %s173_s19, %s174_s20  }
  0x12   :  { %s175_s23 = smov [#allocation6]   ;;  %s146_s27 = scalar_lea.hbm %s220_s1, 256 }
  0x13   :  { %s26_s24 = sshll.u32 %s175_s23, 4  ;;  %p147_p8 = scmp.ne.s32.totalorder %s220_s1, %s146_s27  ;;  %s27_s24 = int_to_ptr.vmem [resolvable:$true] %s26_s24 }
  0x14   :  { %p150_p9 = scmp.lt.u32.totalorder %s146_s27, %s220_s1 }
  0x16   :  { %p152_p10 = pnand %p150_p9, %p147_p8 }
  0x18   :  { %155 = shalt.err (!%p152_p10)
}
  0x19   :  { %s156_s4 = scalar_lea.vmem %s27_s24, 256  ;;  %p161_p12 = scmp.lt.s32.totalorder %s27_s24, %s27_s24 }
  0x1a   :  { %p157_p11 = scmp.ne.s32.totalorder %s27_s24, %s156_s4  ;;  %p162_p13 = scmp.lt.s32.totalorder %s156_s4, %s156_s4 }
  0x1c   :  { %p163_p0 = por %p162_p13, %p161_p12 }
  0x1e   :  { %p164_p1 = pnand %p163_p0, %p157_p11 }
  0x20   :  { %167 = shalt.err (!%p164_p1)
}
  0x21   :  { %32 = dma.hbm_to_vmem [thread:$0]  %s220_s1, 256, %s27_s24, [#allocation7], %s173_s19, %s173_s19, %s174_s20  }
  0x22   :  { %168 = dma.done.wait [#allocation5], 256  }
  0x23   :  { %169 = vsyncadd [#allocation5], 4294967040 }
  0x24   :  { %170 = dma.done.wait [#allocation7], 256  }
  0x25   :  { %171 = vsyncadd [#allocation7], 4294967040  ;;  %v176_v0 = vmov 0.0   ;;  %v45_v1 = vld [vmem:[#allocation4] sm:$0xff]  ;;  %v46_v2 = vld [vmem:[#allocation4 + $0x8] sm:$0xff]  ;;  %vm66_vm0 = vcmask 1041409  }
  0x26   :  { %44 = vst [vmem:[#allocation3] sm:$0x3] %v176_v0  ;;  %43 = vst [vmem:[#allocation2] sm:$0x3] %v176_v0  ;;  %v47_v3 = vld [vmem:[#allocation6] sm:$0xff]  ;;  %v48_v4 = vld [vmem:[#allocation6 + $0x8] sm:$0xff] }
  0x27   :  { %v72_v5 = vadd.f32 %v47_v3, %v45_v1  ;;  %v50_v6 = vmul.f32 %v47_v3, %v45_v1  ;;  %v73_v7 = vadd.f32 %v48_v4, %v46_v2  ;;  %v51_v8 = vmul.f32 %v48_v4, %v46_v2 }
  0x28   :  { %vm96_vm1 = vcmask 1041408   ;;  %vm109_vm2 = vcmask 1024  }
  0x29   :  { %v74_v9 = vrot.slane %v72_v5, 4  ;;  %v52_v10 = vrot.slane %v50_v6, 4  ;;  %v80_v11 = vrot.slane %v73_v7, 4  ;;  %v58_v12 = vrot.slane %v51_v8, 4 }
  0x2b   :  { %v75_v13 = vadd.f32 %v74_v9, %v72_v5  ;;  %v53_v14 = vadd.f32 %v52_v10, %v50_v6  ;;  %v81_v15 = vadd.f32 %v80_v11, %v73_v7  ;;  %v59_v16 = vadd.f32 %v58_v12, %v51_v8 }
  0x2d   :  { %v76_v17 = vrot.slane %v75_v13, 2  ;;  %v54_v18 = vrot.slane %v53_v14, 2  ;;  %v82_v19 = vrot.slane %v81_v15, 2  ;;  %v60_v20 = vrot.slane %v59_v16, 2  ;;  %v71_v31 = vld [vmem:[#allocation3] sm:$0x3] }
  0x2e   :  { %v49_v33 = vld [vmem:[#allocation2] sm:$0x3] }
  0x2f   :  { %v77_v21 = vadd.f32 %v76_v17, %v75_v13  ;;  %v55_v22 = vadd.f32 %v54_v18, %v53_v14  ;;  %v83_v23 = vadd.f32 %v82_v19, %v81_v15  ;;  %v61_v24 = vadd.f32 %v60_v20, %v59_v16 }
  0x31   :  { %v78_v25 = vrot.slane %v77_v21, 1  ;;  %v56_v26 = vrot.slane %v55_v22, 1  ;;  %v84_v27 = vrot.slane %v83_v23, 1  ;;  %v62_v28 = vrot.slane %v61_v24, 1 }
  0x33   :  { %v79_v29 = vadd.f32 %v78_v25, %v77_v21  ;;  %v57_v30 = vadd.f32 %v56_v26, %v55_v22  ;;  %v85_v32 = vadd.f32 %v84_v27, %v83_v23  ;;  %v63_v34 = vadd.f32 %v62_v28, %v61_v24 }
  0x35   :  { %v88_v35 = vsel %vm66_vm0, %v85_v32, %v79_v29  ;;  %v67_v36 = vsel %vm66_vm0, %v63_v34, %v57_v30 }
  0x36   :  { %v90_v37 = vadd.f32 %v88_v35, %v71_v31  ;;  %v69_v38 = vadd.f32 %v67_v36, %v49_v33 }
  0x38   :  { %91 = vst [vmem:[#allocation3] sm:$0x3] %v90_v37  ;;  %70 = vst [vmem:[#allocation2] sm:$0x3] %v69_v38 }
  0x3f   :  { %v100_v39 = vld [vmem:[#allocation3] sm:$0x3]  ;;  %v95_v40 = vld [vmem:[#allocation2] sm:$0x3] }
  0x40   :  { %v101_v41 = vsel %vm96_vm1, %v100_v39, 0.0  ;;  %v97_v42 = vsel %vm96_vm1, %v95_v40, 0.0 }
  0x41   :  { %102 = vadd.xlane.f32.xlu0 %v101_v41 }
  0x45   :  { %98 = vadd.xlane.f32.xlu0 %v97_v42 }
  0xce   :  { %v103_v43 = vpop.xlane.xlu0 %102 }
  0xcf   :  { %v106_v44 = vadd.f32 1.0, %v103_v43 }
  0xd1   :  { %122 = vrcp.f32 %v106_v44 }
  0xd2   :  { %v99_v45 = vpop.xlane.xlu0 %98 }
  0xd3   :  { %v104_v46 = vmul.f32 2.0, %v99_v45 }
  0xd5   :  { %v105_v47 = vadd.f32 1.0, %v104_v46 }
  0xdb   :  { %v123_v48 = vpop.eup %122 }
  0xdc   :  { %v108_v49 = vmul.f32 %v123_v48, %v105_v47 }
  0xde   :  { %110 = vst.msk [vmem:[%s221_s2] sm:$0x3] %vm109_vm2, %v108_v49 }
  0xdf   :  { %115 = vsyncpa [#allocation5], 1 }
  0xe0   :  { %116 = vsyncpa [#allocation7], 1 }

</bundles_post_ra>
